<compile_context>
chip_gen: v7x
topology: tpu7x:2x2x1
jax: 0.10.0
libtpu: 0.0.40
codegen_flags: <defaults>
</compile_context>

<pallas_src>
import math

import jax
import jax.numpy as jnp
from jax.experimental import pallas as pl
from jax.experimental.pallas import tpu as pltpu


def _mlp_kernel(x_ref, w1_ref, b1_ref, w2_ref, b2_ref, w3_ref, b3_ref, o_ref):
    # x:(TM, Dk)   w1:(Dk, Hp) b1:(1, Hp)   w2:(Hp, Hp) b2:(1, Hp)
    # w3:(Hp, Din) b3:(1, Din)
    # o: (TM*Din//128, 128) lane-packed   or   (TM, Din) narrow dense fallback.
    x = x_ref[...]
    h1 = jnp.dot(x, w1_ref[...], preferred_element_type=jnp.float32) + b1_ref[...]
    h1 = jnp.maximum(h1, 0.0).astype(w2_ref.dtype)
    h2 = jnp.dot(h1, w2_ref[...], preferred_element_type=jnp.float32) + b2_ref[...]
    h2 = jnp.maximum(h2, 0.0).astype(w3_ref.dtype)
    y = jnp.dot(h2, w3_ref[...], preferred_element_type=jnp.float32) + b3_ref[...]
    # Lane-pack the store (row-major-equivalent reshape; one XLU shuffle per
    # tile and the XLU is otherwise idle here).  No-op in the narrow fallback.
    o_ref[...] = y.astype(o_ref.dtype).reshape(o_ref.shape)


def _round_up(v, m):
    return ((v + m - 1) // m) * m


def _pad_to(a, shape):
    pads = [(0, t - s) for s, t in zip(a.shape, shape)]
    if all(p == (0, 0) for p in pads):
        return a
    return jnp.pad(a, pads)


def diffusion_model_forward(x, condition, params, *, tm=1024,
                            compute_dtype=jnp.bfloat16):
    """x: (B, S, Din), condition: (B, S, Dcond) -> (B, S, Din)."""
    B, S, Din = x.shape
    Dcond = condition.shape[2]
    Dk = Din + Dcond
    H = params["w1"].shape[1]
    out_dtype = x.dtype

    N = B * S
    H_pad = _round_up(H, 128)

    # ---- Row-tile selection -------------------------------------------------
    tm = max(16, _round_up(int(tm), 16))          # sublane-aligned (f32 & bf16)
    TM = _round_up(N, 16) if N <= tm else tm
    # v7x has 2 TensorCores: prefer >= 2 grid steps when there is enough work.
    if pl.cdiv(N, TM) < 2 and N >= 32:
        TM = _round_up(pl.cdiv(N, 2), 16)
    # Lane-packed output wants (TM*Din) % 1024 == 0 so the packed tile keeps an
    # 8-multiple sublane dim (not needed when the whole output is one tile).
    pack_align = 1024 // math.gcd(Din, 1024)
    if TM % pack_align != 0 and pl.cdiv(N, TM) > 1:
        cand = _round_up(TM, pack_align)
        if cand <= max(tm, _round_up(N, 16)) and cand <= 4096:
            TM = cand
    N_pad = _round_up(N, TM)
    grid = (N_pad // TM,)

    # ---- VMEM-residency guard (v7x: 64 MiB physical) -------------------------
    # Weights are double-buffered by the pipeline; if f32 would crowd VMEM, use bf16.
    # TODO(synk): beyond H_pad ~ 4k even bf16 weights overflow residency; that case
    # needs a second grid axis tiling W2/W3 with an f32 VMEM accumulator.
    w_elems = Dk * H_pad + H_pad * H_pad + H_pad * max(Din, 128)
    if 2 * w_elems * jnp.dtype(compute_dtype).itemsize > (40 << 20):
        compute_dtype = jnp.bfloat16

    c_item = jnp.dtype(compute_dtype).itemsize
    o_item = jnp.dtype(out_dtype).itemsize

    # ---- Output layout choice -------------------------------------------------
    pack_rows = (TM * Din) // 128 if (TM * Din) % 128 == 0 else 0
    use_packed = pack_rows > 0 and (pack_rows % 8 == 0 or N_pad == TM)

    # ---- Parameter / input prep (weights stored as (in, out)) ----------------
    w1 = _pad_to(params["w1"].astype(compute_dtype), (Dk, H_pad))
    b1 = _pad_to(params["b1"].astype(jnp.float32), (1, H_pad))
    w2 = _pad_to(params["w2"].astype(compute_dtype), (H_pad, H_pad))
    b2 = _pad_to(params["b2"].astype(jnp.float32), (1, H_pad))
    w3 = _pad_to(params["w3"].astype(compute_dtype), (H_pad, Din))
    b3 = _pad_to(params["b3"].astype(jnp.float32), (1, Din))

    # torch.cat folded into the wrapper copy (reshape/cast) that XLA does anyway;
    # the kernel then runs fc1 as a single K=Dk matmul.
    xin = jnp.concatenate([x, condition], axis=2).reshape(N, Dk).astype(compute_dtype)
    xin = _pad_to(xin, (N_pad, Dk))

    row_spec = pl.BlockSpec((TM, Dk), lambda i: (i, 0))
    resident = lambda shape: pl.BlockSpec(shape, lambda i: (0, 0))
    # NOTE: constant-index weight specs keep the default double-buffering; at
    # these sizes the extra buffer is negligible, so pipeline_mode is left alone.

    weight_bytes = (w1.size + w2.size + w3.size) * c_item \
                   + (b1.size + b2.size + b3.size) * 4
    vmem_est = (2 * TM * Dk * c_item          # double-buffered activation tiles
                + 2 * TM * Din * o_item       # double-buffered output tiles
                + 2 * weight_bytes            # resident weights (2 buffers)
                + 3 * TM * H_pad * 4)         # f32 intermediates
    vmem_limit = int(max(8 << 20, min(48 << 20, 2 * vmem_est)))

    flops = 2 * N * (Dk * H_pad + H_pad * H_pad + H_pad * Din)
    bytes_accessed = int(N * Dk * c_item + N * Din * o_item + weight_bytes)
    cost = pl.CostEstimate(flops=flops, transcendentals=0,
                           bytes_accessed=bytes_accessed)

    def _call(packed):
        if packed:
            out_shape = jax.ShapeDtypeStruct((N_pad * Din // 128, 128), out_dtype)
            out_spec = pl.BlockSpec((pack_rows, 128), lambda i: (i, 0))
        else:
            # Narrow dense store: block last dim == full array dim, so it is
            # always legal and still avoids zero-padded write amplification.
            out_shape = jax.ShapeDtypeStruct((N_pad, Din), out_dtype)
            out_spec = pl.BlockSpec((TM, Din), lambda i: (i, 0))
        return pl.pallas_call(
            _mlp_kernel,
            out_shape=out_shape,
            grid_spec=pltpu.PrefetchScalarGridSpec(
                num_scalar_prefetch=0,
                grid=grid,
                in_specs=[
                    row_spec,                      # activation rows (x ++ cond)
                    resident((Dk, H_pad)),         # W1
                    resident((1, H_pad)),          # b1
                    resident((H_pad, H_pad)),      # W2
                    resident((1, H_pad)),          # b2
                    resident((H_pad, Din)),        # W3 (true output width)
                    resident((1, Din)),            # b3
                ],
                out_specs=out_spec,
            ),
            compiler_params=pltpu.CompilerParams(
                dimension_semantics=("parallel",),
                vmem_limit_bytes=vmem_limit,
            ),
            cost_estimate=cost,
        )(xin, w1, b1, w2, b2, w3, b3)

    if use_packed:
        try:
            out = _call(True).reshape(N_pad, Din)
        except Exception:
            # Defensive: if this Mosaic build cannot lower the in-kernel
            # lane-packing relayout, use the narrow dense store instead.
            out = _call(False)
    else:
        out = _call(False)

    return out[:N].reshape(B, S, Din)


def init_params(key, input_dim, condition_dim, hidden_dim):
    """Deterministic init mimicking nn.Linear defaults; weights stored as (in, out)."""
    ks = jax.random.split(key, 6)

    def linear(kw, kb, fan_in, fan_out):
        bound = 1.0 / jnp.sqrt(jnp.float32(fan_in))
        w = jax.random.uniform(kw, (fan_in, fan_out), jnp.float32, -bound, bound)
        b = jax.random.uniform(kb, (1, fan_out), jnp.float32, -bound, bound)
        return w, b

    w1, b1 = linear(ks[0], ks[1], input_dim + condition_dim, hidden_dim)
    w2, b2 = linear(ks[2], ks[3], hidden_dim, hidden_dim)
    w3, b3 = linear(ks[4], ks[5], hidden_dim, input_dim)
    return {"w1": w1, "b1": b1, "w2": w2, "b2": b2, "w3": w3, "b3": b3}


if __name__ == "__main__":
    B, S = 2, 8
    input_dim, condition_dim, hidden_dim = 16, 16, 128   # module default hidden_dim

    key = jax.random.PRNGKey(0)
    kx, kc, kp = jax.random.split(key, 3)
    x = jax.random.normal(kx, (B, S, input_dim), jnp.float32)
    condition = jax.random.normal(kc, (B, S, condition_dim), jnp.float32)
    params = init_params(kp, input_dim, condition_dim, hidden_dim)

    # Plain-JAX reference of the PyTorch forward.
    xin = jnp.concatenate([x, condition], axis=2)
    h1 = jnp.maximum(xin @ params["w1"] + params["b1"], 0.0)
    h2 = jnp.maximum(h1 @ params["w2"] + params["b2"], 0.0)
    ref = h2 @ params["w3"] + params["b3"]

    # f32 matmul path (tight check).
    out_f32 = jax.block_until_ready(
        diffusion_model_forward(x, condition, params, compute_dtype=jnp.float32))
    assert out_f32.shape == (B, S, input_dim)
    assert jnp.allclose(out_f32, ref, atol=1e-5, rtol=1e-5)

    # Default bf16 matmul path (MXU-native on v6e/v7x); f32 accumulation, loose tolerance.
    out_bf16 = jax.block_until_ready(diffusion_model_forward(x, condition, params))
    assert out_bf16.shape == (B, S, input_dim)
    assert jnp.allclose(out_bf16, ref, atol=2e-1, rtol=2e-1)

    print("KERNEL_OK")
</pallas_src>

<mosaic_0001>
module attributes {stable_mosaic.version = 11 : i64} {
  func.func @_mlp_kernel(%arg0: i32, %arg1: memref<16x32xf32, #tpu.memory_space<vmem>>, %arg2: memref<32x128xf32, #tpu.memory_space<vmem>>, %arg3: memref<1x128xf32, #tpu.memory_space<vmem>>, %arg4: memref<128x128xf32, #tpu.memory_space<vmem>>, %arg5: memref<1x128xf32, #tpu.memory_space<vmem>>, %arg6: memref<128x16xf32, #tpu.memory_space<vmem>>, %arg7: memref<1x16xf32, #tpu.memory_space<vmem>>, %arg8: memref<2x128xf32, #tpu.memory_space<vmem>>) attributes {dimension_semantics = [#tpu.dimension_semantics<parallel>], iteration_bounds = array<i64: 1>, scalar_prefetch = 0 : i64, scratch_operands = 0 : i64, tpu.core_type = #tpu.core_type<tc>, window_params = [{transform_indices = @transform_0, window_bounds = array<i64: 16, 32>}, {pipeline_mode = #tpu.pipeline_mode<synchronous>, transform_indices = @transform_1, window_bounds = array<i64: 32, 128>}, {pipeline_mode = #tpu.pipeline_mode<synchronous>, transform_indices = @transform_2, window_bounds = array<i64: 1, 128>}, {pipeline_mode = #tpu.pipeline_mode<synchronous>, transform_indices = @transform_3, window_bounds = array<i64: 128, 128>}, {pipeline_mode = #tpu.pipeline_mode<synchronous>, transform_indices = @transform_4, window_bounds = array<i64: 1, 128>}, {pipeline_mode = #tpu.pipeline_mode<synchronous>, transform_indices = @transform_5, window_bounds = array<i64: 128, 16>}, {pipeline_mode = #tpu.pipeline_mode<synchronous>, transform_indices = @transform_6, window_bounds = array<i64: 1, 16>}, {transform_indices = @transform_7, window_bounds = array<i64: 2, 128>}]} {
    %c0 = arith.constant 0 : index
    %c0_0 = arith.constant 0 : index
    %0 = vector.load %arg1[%c0, %c0_0] : memref<16x32xf32, #tpu.memory_space<vmem>>, vector<16x32xf32>
    %c0_1 = arith.constant 0 : index
    %c0_2 = arith.constant 0 : index
    %1 = vector.load %arg2[%c0_1, %c0_2] : memref<32x128xf32, #tpu.memory_space<vmem>>, vector<32x128xf32>
    %cst = arith.constant dense<0.000000e+00> : vector<16x128xf32>
    %2 = tpu.matmul %0, %1, %cst {dimension_numbers = #tpu.dot_dimension_numbers<[1], [0], [0], [1], [0, 0, 1, 1], [], []>} : vector<16x32xf32>, vector<32x128xf32>, vector<16x128xf32> -> vector<16x128xf32>
    %c0_3 = arith.constant 0 : index
    %c0_4 = arith.constant 0 : index
    %3 = vector.load %arg3[%c0_3, %c0_4] : memref<1x128xf32, #tpu.memory_space<vmem>>, vector<1x128xf32>
    %4 = vector.broadcast %3 : vector<1x128xf32> to vector<16x128xf32>
    %5 = arith.addf %2, %4 : vector<16x128xf32>
    %cst_5 = arith.constant 0.000000e+00 : f32
    %6 = vector.broadcast %cst_5 : f32 to vector<16x128xf32>
    %7 = arith.maximumf %5, %6 : vector<16x128xf32>
    %c0_6 = arith.constant 0 : index
    %c0_7 = arith.constant 0 : index
    %8 = vector.load %arg4[%c0_6, %c0_7] : memref<128x128xf32, #tpu.memory_space<vmem>>, vector<128x128xf32>
    %cst_8 = arith.constant dense<0.000000e+00> : vector<16x128xf32>
    %9 = tpu.matmul %7, %8, %cst_8 {dimension_numbers = #tpu.dot_dimension_numbers<[1], [0], [0], [1], [0, 0, 1, 1], [], []>} : vector<16x128xf32>, vector<128x128xf32>, vector<16x128xf32> -> vector<16x128xf32>
    %c0_9 = arith.constant 0 : index
    %c0_10 = arith.constant 0 : index
    %10 = vector.load %arg5[%c0_9, %c0_10] : memref<1x128xf32, #tpu.memory_space<vmem>>, vector<1x128xf32>
    %11 = vector.broadcast %10 : vector<1x128xf32> to vector<16x128xf32>
    %12 = arith.addf %9, %11 : vector<16x128xf32>
    %cst_11 = arith.constant 0.000000e+00 : f32
    %13 = vector.broadcast %cst_11 : f32 to vector<16x128xf32>
    %14 = arith.maximumf %12, %13 : vector<16x128xf32>
    %c0_12 = arith.constant 0 : index
    %c0_13 = arith.constant 0 : index
    %15 = vector.load %arg6[%c0_12, %c0_13] : memref<128x16xf32, #tpu.memory_space<vmem>>, vector<128x16xf32>
    %cst_14 = arith.constant dense<0.000000e+00> : vector<16x16xf32>
    %16 = tpu.matmul %14, %15, %cst_14 {dimension_numbers = #tpu.dot_dimension_numbers<[1], [0], [0], [1], [0, 0, 1, 1], [], []>} : vector<16x128xf32>, vector<128x16xf32>, vector<16x16xf32> -> vector<16x16xf32>
    %c0_15 = arith.constant 0 : index
    %c0_16 = arith.constant 0 : index
    %17 = vector.load %arg7[%c0_15, %c0_16] : memref<1x16xf32, #tpu.memory_space<vmem>>, vector<1x16xf32>
    %18 = vector.broadcast %17 : vector<1x16xf32> to vector<16x16xf32>
    %19 = arith.addf %16, %18 : vector<16x16xf32>
    %20 = vector.shape_cast %19 : vector<16x16xf32> to vector<2x128xf32>
    %c0_17 = arith.constant 0 : index
    %c0_18 = arith.constant 0 : index
    %21 = vector.load %arg8[%c0_17, %c0_18] : memref<2x128xf32, #tpu.memory_space<vmem>>, vector<2x128xf32>
    tpu.vector_store %arg8[%c0_17, %c0_18], %20 {strides = array<i32>} : memref<2x128xf32, #tpu.memory_space<vmem>>, vector<2x128xf32>,
    return
  }
  func.func @transform_0(%arg0: i32) -> (i32, i32) {
    %c0_i32 = arith.constant 0 : i32
    %c0_i32_0 = arith.constant 0 : i32
    return %arg0, %c0_i32 : i32, i32
  }
  func.func @transform_1(%arg0: i32) -> (i32, i32) {
    %c0_i32 = arith.constant 0 : i32
    %c0_i32_0 = arith.constant 0 : i32
    %c0_i32_1 = arith.constant 0 : i32
    return %c0_i32, %c0_i32_0 : i32, i32
  }
  func.func @transform_2(%arg0: i32) -> (i32, i32) {
    %c0_i32 = arith.constant 0 : i32
    %c0_i32_0 = arith.constant 0 : i32
    %c0_i32_1 = arith.constant 0 : i32
    return %c0_i32, %c0_i32_0 : i32, i32
  }
  func.func @transform_3(%arg0: i32) -> (i32, i32) {
    %c0_i32 = arith.constant 0 : i32
    %c0_i32_0 = arith.constant 0 : i32
    %c0_i32_1 = arith.constant 0 : i32
    return %c0_i32, %c0_i32_0 : i32, i32
  }
  func.func @transform_4(%arg0: i32) -> (i32, i32) {
    %c0_i32 = arith.constant 0 : i32
    %c0_i32_0 = arith.constant 0 : i32
    %c0_i32_1 = arith.constant 0 : i32
    return %c0_i32, %c0_i32_0 : i32, i32
  }
  func.func @transform_5(%arg0: i32) -> (i32, i32) {
    %c0_i32 = arith.constant 0 : i32
    %c0_i32_0 = arith.constant 0 : i32
    %c0_i32_1 = arith.constant 0 : i32
    return %c0_i32, %c0_i32_0 : i32, i32
  }
  func.func @transform_6(%arg0: i32) -> (i32, i32) {
    %c0_i32 = arith.constant 0 : i32
    %c0_i32_0 = arith.constant 0 : i32
    %c0_i32_1 = arith.constant 0 : i32
    return %c0_i32, %c0_i32_0 : i32, i32
  }
  func.func @transform_7(%arg0: i32) -> (i32, i32) {
    %c0_i32 = arith.constant 0 : i32
    %c0_i32_0 = arith.constant 0 : i32
    return %arg0, %c0_i32 : i32, i32
  }
}

module attributes {stable_mosaic.version = 11 : i64} {
  func.func @_mlp_kernel(%arg0: i32, %arg1: memref<16x32xf32, #tpu.memory_space<vmem>>, %arg2: memref<32x128xf32, #tpu.memory_space<vmem>>, %arg3: memref<1x128xf32, #tpu.memory_space<vmem>>, %arg4: memref<128x128xf32, #tpu.memory_space<vmem>>, %arg5: memref<1x128xf32, #tpu.memory_space<vmem>>, %arg6: memref<128x16xf32, #tpu.memory_space<vmem>>, %arg7: memref<1x16xf32, #tpu.memory_space<vmem>>, %arg8: memref<16x16xf32, #tpu.memory_space<vmem>>) attributes {dimension_semantics = [#tpu.dimension_semantics<parallel>], iteration_bounds = array<i64: 1>, scalar_prefetch = 0 : i64, scratch_operands = 0 : i64, tpu.core_type = #tpu.core_type<tc>, window_params = [{transform_indices = @transform_0, window_bounds = array<i64: 16, 32>}, {pipeline_mode = #tpu.pipeline_mode<synchronous>, transform_indices = @transform_1, window_bounds = array<i64: 32, 128>}, {pipeline_mode = #tpu.pipeline_mode<synchronous>, transform_indices = @transform_2, window_bounds = array<i64: 1, 128>}, {pipeline_mode = #tpu.pipeline_mode<synchronous>, transform_indices = @transform_3, window_bounds = array<i64: 128, 128>}, {pipeline_mode = #tpu.pipeline_mode<synchronous>, transform_indices = @transform_4, window_bounds = array<i64: 1, 128>}, {pipeline_mode = #tpu.pipeline_mode<synchronous>, transform_indices = @transform_5, window_bounds = array<i64: 128, 16>}, {pipeline_mode = #tpu.pipeline_mode<synchronous>, transform_indices = @transform_6, window_bounds = array<i64: 1, 16>}, {transform_indices = @transform_7, window_bounds = array<i64: 16, 16>}]} {
    %c0 = arith.constant 0 : index
    %c0_0 = arith.constant 0 : index
    %0 = vector.load %arg1[%c0, %c0_0] : memref<16x32xf32, #tpu.memory_space<vmem>>, vector<16x32xf32>
    %c0_1 = arith.constant 0 : index
    %c0_2 = arith.constant 0 : index
    %1 = vector.load %arg2[%c0_1, %c0_2] : memref<32x128xf32, #tpu.memory_space<vmem>>, vector<32x128xf32>
    %cst = arith.constant dense<0.000000e+00> : vector<16x128xf32>
    %2 = tpu.matmul %0, %1, %cst {dimension_numbers = #tpu.dot_dimension_numbers<[1], [0], [0], [1], [0, 0, 1, 1], [], []>} : vector<16x32xf32>, vector<32x128xf32>, vector<16x128xf32> -> vector<16x128xf32>
    %c0_3 = arith.constant 0 : index
    %c0_4 = arith.constant 0 : index
    %3 = vector.load %arg3[%c0_3, %c0_4] : memref<1x128xf32, #tpu.memory_space<vmem>>, vector<1x128xf32>
    %4 = vector.broadcast %3 : vector<1x128xf32> to vector<16x128xf32>
    %5 = arith.addf %2, %4 : vector<16x128xf32>
    %cst_5 = arith.constant 0.000000e+00 : f32
    %6 = vector.broadcast %cst_5 : f32 to vector<16x128xf32>
    %7 = arith.maximumf %5, %6 : vector<16x128xf32>
    %c0_6 = arith.constant 0 : index
    %c0_7 = arith.constant 0 : index
    %8 = vector.load %arg4[%c0_6, %c0_7] : memref<128x128xf32, #tpu.memory_space<vmem>>, vector<128x128xf32>
    %cst_8 = arith.constant dense<0.000000e+00> : vector<16x128xf32>
    %9 = tpu.matmul %7, %8, %cst_8 {dimension_numbers = #tpu.dot_dimension_numbers<[1], [0], [0], [1], [0, 0, 1, 1], [], []>} : vector<16x128xf32>, vector<128x128xf32>, vector<16x128xf32> -> vector<16x128xf32>
    %c0_9 = arith.constant 0 : index
    %c0_10 = arith.constant 0 : index
    %10 = vector.load %arg5[%c0_9, %c0_10] : memref<1x128xf32, #tpu.memory_space<vmem>>, vector<1x128xf32>
    %11 = vector.broadcast %10 : vector<1x128xf32> to vector<16x128xf32>
    %12 = arith.addf %9, %11 : vector<16x128xf32>
    %cst_11 = arith.constant 0.000000e+00 : f32
    %13 = vector.broadcast %cst_11 : f32 to vector<16x128xf32>
    %14 = arith.maximumf %12, %13 : vector<16x128xf32>
    %c0_12 = arith.constant 0 : index
    %c0_13 = arith.constant 0 : index
    %15 = vector.load %arg6[%c0_12, %c0_13] : memref<128x16xf32, #tpu.memory_space<vmem>>, vector<128x16xf32>
    %cst_14 = arith.constant dense<0.000000e+00> : vector<16x16xf32>
    %16 = tpu.matmul %14, %15, %cst_14 {dimension_numbers = #tpu.dot_dimension_numbers<[1], [0], [0], [1], [0, 0, 1, 1], [], []>} : vector<16x128xf32>, vector<128x16xf32>, vector<16x16xf32> -> vector<16x16xf32>
    %c0_15 = arith.constant 0 : index
    %c0_16 = arith.constant 0 : index
    %17 = vector.load %arg7[%c0_15, %c0_16] : memref<1x16xf32, #tpu.memory_space<vmem>>, vector<1x16xf32>
    %18 = vector.broadcast %17 : vector<1x16xf32> to vector<16x16xf32>
    %19 = arith.addf %16, %18 : vector<16x16xf32>
    %c0_17 = arith.constant 0 : index
    %c0_18 = arith.constant 0 : index
    %20 = vector.load %arg8[%c0_17, %c0_18] : memref<16x16xf32, #tpu.memory_space<vmem>>, vector<16x16xf32>
    tpu.vector_store %arg8[%c0_17, %c0_18], %19 {strides = array<i32>} : memref<16x16xf32, #tpu.memory_space<vmem>>, vector<16x16xf32>,
    return
  }
  func.func @transform_0(%arg0: i32) -> (i32, i32) {
    %c0_i32 = arith.constant 0 : i32
    %c0_i32_0 = arith.constant 0 : i32
    return %arg0, %c0_i32 : i32, i32
  }
  func.func @transform_1(%arg0: i32) -> (i32, i32) {
    %c0_i32 = arith.constant 0 : i32
    %c0_i32_0 = arith.constant 0 : i32
    %c0_i32_1 = arith.constant 0 : i32
    return %c0_i32, %c0_i32_0 : i32, i32
  }
  func.func @transform_2(%arg0: i32) -> (i32, i32) {
    %c0_i32 = arith.constant 0 : i32
    %c0_i32_0 = arith.constant 0 : i32
    %c0_i32_1 = arith.constant 0 : i32
    return %c0_i32, %c0_i32_0 : i32, i32
  }
  func.func @transform_3(%arg0: i32) -> (i32, i32) {
    %c0_i32 = arith.constant 0 : i32
    %c0_i32_0 = arith.constant 0 : i32
    %c0_i32_1 = arith.constant 0 : i32
    return %c0_i32, %c0_i32_0 : i32, i32
  }
  func.func @transform_4(%arg0: i32) -> (i32, i32) {
    %c0_i32 = arith.constant 0 : i32
    %c0_i32_0 = arith.constant 0 : i32
    %c0_i32_1 = arith.constant 0 : i32
    return %c0_i32, %c0_i32_0 : i32, i32
  }
  func.func @transform_5(%arg0: i32) -> (i32, i32) {
    %c0_i32 = arith.constant 0 : i32
    %c0_i32_0 = arith.constant 0 : i32
    %c0_i32_1 = arith.constant 0 : i32
    return %c0_i32, %c0_i32_0 : i32, i32
  }
  func.func @transform_6(%arg0: i32) -> (i32, i32) {
    %c0_i32 = arith.constant 0 : i32
    %c0_i32_0 = arith.constant 0 : i32
    %c0_i32_1 = arith.constant 0 : i32
    return %c0_i32, %c0_i32_0 : i32, i32
  }
  func.func @transform_7(%arg0: i32) -> (i32, i32) {
    %c0_i32 = arith.constant 0 : i32
    %c0_i32_0 = arith.constant 0 : i32
    return %arg0, %c0_i32 : i32, i32
  }
}

</mosaic_0001>

<bundles_post_ra>
// kernel: tpu_custom_call.1
= control target key start
LH: loop header
LB: loop body
LE: loop exit
PB: predicated region body
PF: predicated region fallthrough
CT: control target
= control target key end

     0   :  { %12 = vsyncpa [#allocation3], 0  ;;  %s795_s0 = inlined_call_operand.vmem [shape: f32[16,32], index: 0, kind: input, shape index: {}]   ;;  %s796_s1 = inlined_call_operand.hbm [shape: f32[32,128], index: 1, kind: input, shape index: {}]   ;;  %s797_s2 = inlined_call_operand.vmem [shape: f32[1,128], index: 2, kind: input, shape index: {}]   ;;  %s798_s3 = inlined_call_operand.vmem [shape: f32[128,128], index: 3, kind: input, shape index: {}]   ;;  %s799_s4 = inlined_call_operand.vmem [shape: f32[1,128], index: 4, kind: input, shape index: {}]   ;;  %s800_s5 = inlined_call_operand.vmem [shape: f32[128,16], index: 5, kind: input, shape index: {}]   ;;  %s801_s6 = inlined_call_operand.vmem [shape: f32[1,16], index: 6, kind: input, shape index: {}]   ;;  %s802_s7 = inlined_call_operand.hbm [shape: f32[16,16], index: 7, kind: output, shape index: {}]  }
   0x1   :  { %13 = vsyncpa [#allocation4], 0  ;;  %s608_s24 = smov [#allocation2]   ;;  %s560_s28 = scalar_lea.hbm %s796_s1, 512 }
   0x2   :  { %s21_s25 = sshll.u32 %s608_s24, 4  ;;  %p561_p0 = scmp.ne.s32.totalorder %s796_s1, %s560_s28  ;;  %s22_s25 = int_to_ptr.vmem [resolvable:$true] %s21_s25 }
   0x3   :  { %p564_p1 = scmp.lt.u32.totalorder %s560_s28, %s796_s1 }
   0x5   :  { %p566_p2 = pnand %p564_p1, %p561_p0 }
   0x7   :  { %569 = shalt.err (!%p566_p2)
}
   0x8   :  { %s570_s10 = scalar_lea.vmem %s22_s25, 512  ;;  %p575_p4 = scmp.lt.s32.totalorder %s22_s25, %s22_s25 }
   0x9   :  { %p571_p3 = scmp.ne.s32.totalorder %s22_s25, %s570_s10  ;;  %p576_p5 = scmp.lt.s32.totalorder %s570_s10, %s570_s10 }
   0xb   :  { %p577_p6 = por %p576_p5, %p575_p4 }
   0xd   :  { %p578_p7 = pnand %p577_p6, %p571_p3 }
   0xf   :  { %581 = shalt.err (!%p578_p7)
}
  0x10   :  { %s609_s11 = smov 128   ;;  %s610_s12 = smov 8  }
  0x11   :  { %27 = dma.hbm_to_vmem [thread:$0]  %s796_s1, 512, %s22_s25, [#allocation3], %s609_s11, %s609_s11, %s610_s12  }
  0x12   :  { %604 = dma.done.wait [#allocation3], 512  }
  0x13   :  { %605 = vsyncadd [#allocation3], 4294966784  ;;  %vm54_vm0 = vcmask 261120   ;;  %v43_v0 = vld [vmem:[#allocation2] sm:$0xff]  ;;  %v44_v1 = vld [vmem:[#allocation2 + $0x8] sm:$0xff]  ;;  %vm336_vm1 = vcmask 130048  }
  0x14   :  { %v45_v2 = vld [vmem:[#allocation2 + $0x10] sm:$0xff]  ;;  %v484_v3 = vpack.c.bf16 %v44_v1, %v43_v0  ;;  %v46_v4 = vld [vmem:[#allocation2 + $0x18] sm:$0xff]  ;;  %v41_v5 = vld [vmem:[%s795_s0] sm:$0xff] }
  0x15   :  { %v488_v6 = vpack.c.bf16 %v46_v4, %v45_v2  ;;  %411 = vmatprep.mubr.msk.f32.mxu0 %vm54_vm0, %v41_v5  ;;  %v138_v7 = vld [vmem:[%s798_s3] sm:$0xff]  ;;  %v139_v8 = vld [vmem:[%s798_s3 + $0x8] sm:$0xff]  ;;  %v140_v9 = vld [vmem:[%s798_s3 + $0x10] sm:$0xff] }
  0x16   :  { %485 = vmatprep.subr.bf16.mxu0 %v484_v3  ;;  %v492_v10 = vpack.c.bf16 %v139_v8, %v138_v7  ;;  %v141_v11 = vld [vmem:[%s798_s3 + $0x18] sm:$0xff]  ;;  %v142_v13 = vld [vmem:[%s798_s3 + $0x20] sm:$0xff]  ;;  %v143_v14 = vld [vmem:[%s798_s3 + $0x28] sm:$0xff] }
  0x17   :  { %487 = vmatpush3.bf16.msra.mxu0 %v484_v3  ;;  %v496_v12 = vpack.c.bf16 %v141_v11, %v140_v9  ;;  %v500_v15 = vpack.c.bf16 %v143_v14, %v142_v13  ;;  %v42_v16 = vld [vmem:[%s795_s0 + $0x8] sm:$0xff]  ;;  %v144_v17 = vld [vmem:[%s798_s3 + $0x30] sm:$0xff]  ;;  %v145_v18 = vld [vmem:[%s798_s3 + $0x38] sm:$0xff] }
  0x18   :  { %489 = vmatprep.subr.bf16.mxu0 %v488_v6  ;;  %493 = vmatprep.subr.bf16.mxu1 %v492_v10  ;;  %v504_v19 = vpack.c.bf16 %v145_v18, %v144_v17  ;;  %v146_v20 = vld [vmem:[%s798_s3 + $0x40] sm:$0xff]  ;;  %v147_v21 = vld [vmem:[%s798_s3 + $0x48] sm:$0xff]  ;;  %v148_v23 = vld [vmem:[%s798_s3 + $0x50] sm:$0xff] }
  0x19   :  { %495 = vmatpush3.bf16.msra.mxu1 %v492_v10  ;;  %v508_v22 = vpack.c.bf16 %v147_v21, %v146_v20  ;;  %v149_v24 = vld [vmem:[%s798_s3 + $0x58] sm:$0xff]  ;;  %v150_v26 = vld [vmem:[%s798_s3 + $0x60] sm:$0xff]  ;;  %v151_v27 = vld [vmem:[%s798_s3 + $0x68] sm:$0xff] }
  0x1a   :  { %497 = vmatprep.subr.bf16.mxu1 %v496_v12  ;;  %v512_v25 = vpack.c.bf16 %v149_v24, %v148_v23  ;;  %v516_v28 = vpack.c.bf16 %v151_v27, %v150_v26  ;;  %v152_v29 = vld [vmem:[%s798_s3 + $0x70] sm:$0xff]  ;;  %v153_v30 = vld [vmem:[%s798_s3 + $0x78] sm:$0xff]  ;;  %v238_v32 = vld [vmem:[%s800_s5] sm:$0xff] }
  0x1b   :  { %491 = vmatpush3.bf16.msra.mxu0 %v488_v6  ;;  %v520_v31 = vpack.c.bf16 %v153_v30, %v152_v29  ;;  %v239_v33 = vld [vmem:[%s800_s5 + $0x8] sm:$0xff]  ;;  %v240_v34 = vld [vmem:[%s800_s5 + $0x10] sm:$0xff]  ;;  %v241_v36 = vld [vmem:[%s800_s5 + $0x18] sm:$0xff] }
  0x1c   :  { %v524_v35 = vpack.c.bf16 %v239_v33, %v238_v32  ;;  %v528_v37 = vpack.c.bf16 %v241_v36, %v240_v34  ;;  %v242_v38 = vld [vmem:[%s800_s5 + $0x20] sm:$0xff]  ;;  %v243_v39 = vld [vmem:[%s800_s5 + $0x28] sm:$0xff]  ;;  %v244_v41 = vld [vmem:[%s800_s5 + $0x30] sm:$0xff] }
  0x1d   :  { %499 = vmatpush3.bf16.msra.mxu1 %v496_v12  ;;  %v532_v40 = vpack.c.bf16 %v243_v39, %v242_v38  ;;  %v245_v42 = vld [vmem:[%s800_s5 + $0x38] sm:$0xff]  ;;  %v246_v44 = vld [vmem:[%s800_s5 + $0x40] sm:$0xff]  ;;  %v247_v45 = vld [vmem:[%s800_s5 + $0x48] sm:$0xff] }
  0x1e   :  { %412 = vmatmul.mubr.msk.f32.vlgmr.msra.gmra.mrb[0].mxu0 %vm54_vm0, %v42_v16  ;;  %501 = vmatprep.subr.bf16.mxu1 %v500_v15  ;;  %v536_v43 = vpack.c.bf16 %v245_v42, %v244_v41  ;;  %v540_v46 = vpack.c.bf16 %v247_v45, %v246_v44  ;;  %v248_v47 = vld [vmem:[%s800_s5 + $0x50] sm:$0xff]  ;;  %v249_v48 = vld [vmem:[%s800_s5 + $0x58] sm:$0xff]  ;;  %v250_v50 = vld [vmem:[%s800_s5 + $0x60] sm:$0xff] }
  0x1f   :  { %525 = vmatprep.subr.bf16.mxu0 %v524_v35  ;;  %v544_v49 = vpack.c.bf16 %v249_v48, %v248_v47  ;;  %v251_v51 = vld [vmem:[%s800_s5 + $0x68] sm:$0xff]  ;;  %v356_v53 = vld [vmem:[%s797_s2] ss:$0 sm:$0xff]  ;;  %v252_v60 = vld [vmem:[%s800_s5 + $0x70] sm:$0xff] }
  0x20   :  { %527 = vmatpush3.bf16.msra.mxu0 %v524_v35  ;;  %v548_v52 = vpack.c.bf16 %v251_v51, %v250_v50  ;;  %v253_v61 = vld [vmem:[%s800_s5 + $0x78] sm:$0xff]  ;;  %v359_v63 = vld [vmem:[%s799_s4] ss:$0 sm:$0xff]  ;;  %s611_s5 = smov [#allocation5]  }
  0x21   :  { %503 = vmatpush3.bf16.msra.mxu1 %v500_v15  ;;  %529 = vmatprep.subr.bf16.mxu0 %v528_v37  ;;  %v552_v62 = vpack.c.bf16 %v253_v61, %v252_v60  ;;  %v360_v6 = vld [vmem:[%s801_s6] ss:$0 sm:$0xff]  ;;  %s344_s17 = sshll.u32 %s611_s5, 4  ;;  %s345_s17 = int_to_ptr.vmem [resolvable:$true] %s344_s17 }
  0x22   :  { %505 = vmatprep.subr.bf16.mxu1 %v504_v19  ;;  %s582_s4 = scalar_lea.vmem %s345_s17, 256  ;;  %p587_p9 = scmp.lt.s32.totalorder %s345_s17, %s345_s17 }
  0x23   :  { %p583_p8 = scmp.ne.s32.totalorder %s345_s17, %s582_s4  ;;  %p588_p10 = scmp.lt.s32.totalorder %s582_s4, %s582_s4 }
  0x24   :  { %531 = vmatpush3.bf16.msra.mxu0 %v528_v37 }
  0x25   :  { %507 = vmatpush3.bf16.msra.mxu1 %v504_v19  ;;  %533 = vmatprep.subr.bf16.mxu0 %v532_v40  ;;  %p589_p11 = por %p588_p10, %p587_p9 }
  0x26   :  { %509 = vmatprep.subr.bf16.mxu1 %v508_v22 }
  0x27   :  { %p590_p12 = pnand %p589_p11, %p583_p8 }
  0x28   :  { %535 = vmatpush3.bf16.msra.mxu0 %v532_v40 }
  0x29   :  { %511 = vmatpush3.bf16.msra.mxu1 %v508_v22  ;;  %537 = vmatprep.subr.bf16.mxu0 %v536_v43 }
  0x2a   :  { %513 = vmatprep.subr.bf16.mxu1 %v512_v25 }
  0x2c   :  { %539 = vmatpush3.bf16.msra.mxu0 %v536_v43 }
  0x2d   :  { %515 = vmatpush3.bf16.msra.mxu1 %v512_v25  ;;  %541 = vmatprep.subr.bf16.mxu0 %v540_v46 }
  0x2e   :  { %517 = vmatprep.subr.bf16.mxu1 %v516_v28 }
  0x30   :  { %543 = vmatpush3.bf16.msra.mxu0 %v540_v46 }
  0x31   :  { %519 = vmatpush3.bf16.msra.mxu1 %v516_v28  ;;  %545 = vmatprep.subr.bf16.mxu0 %v544_v49 }
  0x32   :  { %521 = vmatprep.subr.bf16.mxu1 %v520_v31 }
  0x34   :  { %547 = vmatpush3.bf16.msra.mxu0 %v544_v49 }
  0x35   :  { %523 = vmatpush3.bf16.msra.mxu1 %v520_v31  ;;  %549 = vmatprep.subr.bf16.mxu0 %v548_v52 }
  0x38   :  { %551 = vmatpush3.bf16.msra.mxu0 %v548_v52 }
  0x39   :  { %553 = vmatprep.subr.bf16.mxu0 %v552_v62 }
  0x3c   :  { %555 = vmatpush3.bf16.msra.mxu0 %v552_v62 }
  0xf1   :  { %v413_v54 = vpop.f32.mrb[0].mxu0 }
  0xf2   :  { %v133_v55 = vadd.f32 %v413_v54, %v356_v53  ;;  %v127_v56 = vpop.f32.mrb[1].mxu0 }
  0xf3   :  { %v128_v57 = vadd.f32 %v356_v53, %v127_v56 }
  0xf4   :  { %v137_v59 = vmax.f32 %v133_v55, 0.0 }
  0xf5   :  { %v136_v58 = vmax.f32 %v128_v57, 0.0 }
  0xf7   :  { %446 = vmatprep.mubr.f32.mxu1 %v136_v58 }
  0xf8   :  { %447 = vmatmul.mubr.f32.vlgmr.msra.gmra.mrb[0].mxu1 %v137_v59 }
 0x1cb   :  { %v448_v0 = vpop.f32.mrb[0].mxu1 }
 0x1cc   :  { %v233_v1 = vadd.f32 %v448_v0, %v359_v63  ;;  %v227_v2 = vpop.f32.mrb[1].mxu1 }
 0x1cd   :  { %v228_v3 = vadd.f32 %v359_v63, %v227_v2 }
 0x1ce   :  { %v237_v5 = vmax.f32 %v233_v1, 0.0 }
 0x1cf   :  { %v236_v4 = vmax.f32 %v228_v3, 0.0 }
 0x1d1   :  { %481 = vmatprep.mubr.f32.mxu0 %v236_v4 }
 0x1d2   :  { %482 = vmatmul.mubr.f32.vlgmr.msra.gmra.mrb[2].mxu0 %v237_v5 }
 0x2a5   :  { %v483_v7 = vpop.f32.mrb[2].mxu0 }
 0x2a6   :  { %v333_v8 = vadd.f32 %v483_v7, %v360_v6  ;;  %v327_v9 = vpop.f32.mrb[3].mxu0 }
 0x2a7   :  { %v328_v10 = vadd.f32 %v360_v6, %v327_v9 }
 0x2a8   :  { %338 = vst.msk [vmem:[#allocation5 + $0x8] sm:$0xff] %vm336_vm1, %v333_v8 }
 0x2a9   :  { %337 = vst.msk [vmem:[#allocation5] sm:$0xff] %vm336_vm1, %v328_v10 }
 0x2aa   :  { %593 = shalt.err (!%p590_p12)
}
 0x2ab   :  { %s594_s6 = scalar_lea.hbm %s802_s7, 256 }
 0x2ac   :  { %p595_p13 = scmp.ne.s32.totalorder %s802_s7, %s594_s6  ;;  %p598_p0 = scmp.lt.u32.totalorder %s594_s6, %s802_s7 }
 0x2ae   :  { %p600_p1 = pnand %p598_p0, %p595_p13 }
 0x2b0   :  { %603 = shalt.err (!%p600_p1)
}
 0x2b1   :  { %350 = dma.vmem_to_hbm [thread:$0]  %s345_s17, 256, %s802_s7, [#allocation4], %s609_s11, %s609_s11, %s610_s12  }
 0x2b2   :  { %606 = dma.done.wait [#allocation4], 256  }
 0x2b3   :  { %607 = vsyncadd [#allocation4], 4294967040 }
 0x2b4   :  { %354 = vsyncpa [#allocation3], 1 }
 0x2b5   :  { %355 = vsyncpa [#allocation4], 1 }

</bundles_post_ra>
